<compile_context>
chip_gen: v5e
topology: v5e:2x2
jax: 0.10.0
libtpu: 0.0.40
codegen_flags: <defaults>
</compile_context>

<pallas_src>
import math
import functools

import jax
import jax.numpy as jnp
from jax.experimental import pallas as pl
from jax.experimental.pallas import tpu as pltpu


def make_hour_freqs(d_model):
    assert d_model % 2 == 0, "d_model must be even"
    half_dim = d_model // 2
    freqs = jnp.arange(half_dim, dtype=jnp.float32) / half_dim
    return (2.0 ** freqs) * (2.0 * math.pi / 24.0)


def _hour_emb_kernel(t_ref, fm_ref, sel_ref, o_ref, *, k):
    # t_ref  : (TM, k)  f32 -- k consecutive time values per packed row
    # fm_ref : (k, W)   f32 -- block-diagonal [freqs | freqs] per row-slot
    # sel_ref: (1, W)   f32 -- 1.0 on sin lanes, 0.0 on cos lanes
    # o_ref  : (TM, W)      -- lane-dense packed embedding (W = k * d_model)
    t = t_ref[...]
    # angles[r, j*d_model + m] = t[r, j] * freqs_dm[m], built as a sum of
    # lane-broadcasts against the block-diagonal freq matrix (VPU-only, exact:
    # each lane sees one true f32 product plus exact zeros).
    angles = t[:, 0:1] * fm_ref[0:1, :]
    for j in range(1, k):
        angles = angles + t[:, j:j + 1] * fm_ref[j:j + 1, :]
    sel = sel_ref[...]                              # (1, W), exactly 0.0 / 1.0
    emb = sel * jnp.sin(angles) + (1.0 - sel) * jnp.cos(angles)
    o_ref[...] = emb.astype(o_ref.dtype)


def continuous_hour_embedding(t, hour_freqs, *, out_dtype=jnp.float32,
                              max_rows_per_tile=1024):
    """t: (B, S) float hours, hour_freqs: (d_model//2,) -> (B, S, d_model)."""
    B, S = t.shape
    half_dim = int(hour_freqs.shape[0])
    d_model = 2 * half_dim
    N = B * S

    # Pack k consecutive output rows into one lane-dense W = k*d_model row
    # (W is always a multiple of 128 -> unmasked lane-dense stores).
    k = 128 // math.gcd(d_model, 128)
    W = k * d_model
    rows = -(-N // k)               # cdiv
    n_pad = rows * k

    t_flat = t.astype(jnp.float32).reshape(-1)
    if n_pad != N:
        t_flat = jnp.pad(t_flat, (0, n_pad - N))
    t_packed = t_flat.reshape(rows, k)          # contiguous HBM reads per tile

    freqs = hour_freqs.astype(jnp.float32)
    freqs_dm = jnp.concatenate([freqs, freqs])                      # (d_model,)
    freq_mat = (jnp.eye(k, dtype=jnp.float32)[:, :, None]
                * freqs_dm[None, None, :]).reshape(k, W)            # (k, W)
    sel = ((jnp.arange(W) % d_model) < half_dim).astype(jnp.float32)
    sel = sel.reshape(1, W)

    # Tile size: keep the double-buffered output tile comfortably under the
    # tightest default scoped-VMEM limit (v5e: 16 MiB); cap at 1024 rows.
    out_bytes = jnp.dtype(out_dtype).itemsize
    tm = (4 * 1024 * 1024) // (W * max(out_bytes, 4))
    tm = max(8, min(max_rows_per_tile, (tm // 8) * 8))
    tm = min(tm, ((rows + 7) // 8) * 8)         # don't exceed (rounded) rows
    grid = (pl.cdiv(rows, tm),)

    cost = pl.CostEstimate(
        flops=2 * n_pad * d_model,
        transcendentals=2 * n_pad * d_model,
        bytes_accessed=n_pad * 4 + n_pad * d_model * out_bytes + (k + 1) * W * 4,
    )

    out_packed = pl.pallas_call(
        functools.partial(_hour_emb_kernel, k=k),
        out_shape=jax.ShapeDtypeStruct((rows, W), out_dtype),
        grid=grid,
        in_specs=[
            pl.BlockSpec((tm, k), lambda i: (i, 0)),   # t tile (row-tiled)
            pl.BlockSpec((k, W), lambda i: (0, 0)),    # tiny constant, resident
            pl.BlockSpec((1, W), lambda i: (0, 0)),    # tiny constant, resident
        ],
        out_specs=pl.BlockSpec((tm, W), lambda i: (i, 0)),
        compiler_params=pltpu.CompilerParams(
            dimension_semantics=("parallel",),          # v7x: shard rows over 2 TCs
        ),
        cost_estimate=cost,
    )(t_packed, freq_mat, sel)

    emb_flat = out_packed.reshape(n_pad, d_model)
    if n_pad != N:
        emb_flat = emb_flat[:N]
    return emb_flat.reshape(B, S, d_model)


def _reference(t, hour_freqs):
    angles = t.astype(jnp.float32)[..., None] * hour_freqs.astype(jnp.float32)
    return jnp.concatenate([jnp.sin(angles), jnp.cos(angles)], axis=-1)


if __name__ == "__main__":
    key = jax.random.PRNGKey(0)

    # Case 1: module-sized test (d_model < 128 -> k=4 row packing).
    B, S, d_model = 2, 8, 32
    t1 = jax.random.uniform(key, (B, S), dtype=jnp.float32, minval=0.0, maxval=24.0)
    f1 = make_hour_freqs(d_model)
    e1 = jax.block_until_ready(continuous_hour_embedding(t1, f1))
    assert e1.shape == (B, S, d_model)
    assert jnp.allclose(e1, _reference(t1, f1), atol=1e-5, rtol=1e-5)

    # Case 2: N not divisible by k (exercises input padding + tail slice).
    B, S, d_model = 3, 37, 64
    t2 = jax.random.uniform(jax.random.PRNGKey(1), (B, S), dtype=jnp.float32,
                            minval=0.0, maxval=24.0)
    f2 = make_hour_freqs(d_model)
    e2 = jax.block_until_ready(continuous_hour_embedding(t2, f2))
    assert e2.shape == (B, S, d_model)
    assert jnp.allclose(e2, _reference(t2, f2), atol=1e-5, rtol=1e-5)

    # Case 3: larger N, d_model multiple of 128 (k=1), multi-step pipelined grid.
    B, S, d_model = 4, 512, 128
    t3 = jax.random.uniform(jax.random.PRNGKey(2), (B, S), dtype=jnp.float32,
                            minval=0.0, maxval=24.0)
    f3 = make_hour_freqs(d_model)
    e3 = jax.block_until_ready(continuous_hour_embedding(t3, f3))
    assert e3.shape == (B, S, d_model)
    assert jnp.allclose(e3, _reference(t3, f3), atol=1e-5, rtol=1e-5)

    print("KERNEL_OK")
</pallas_src>

<mosaic_0001>
module attributes {stable_mosaic.version = 11 : i64} {
  func.func @_hour_emb_kernel(%arg0: i32, %arg1: memref<8x4xf32, #tpu.memory_space<vmem>>, %arg2: memref<4x128xf32, #tpu.memory_space<vmem>>, %arg3: memref<1x128xf32, #tpu.memory_space<vmem>>, %arg4: memref<8x128xf32, #tpu.memory_space<vmem>>) attributes {dimension_semantics = [#tpu.dimension_semantics<parallel>], iteration_bounds = array<i64: 1>, scalar_prefetch = 0 : i64, scratch_operands = 0 : i64, tpu.core_type = #tpu.core_type<tc>, window_params = [{transform_indices = @transform_0, window_bounds = array<i64: 8, 4>}, {pipeline_mode = #tpu.pipeline_mode<synchronous>, transform_indices = @transform_1, window_bounds = array<i64: 4, 128>}, {pipeline_mode = #tpu.pipeline_mode<synchronous>, transform_indices = @transform_2, window_bounds = array<i64: 1, 128>}, {transform_indices = @transform_3, window_bounds = array<i64: 8, 128>}]} {
    %c0 = arith.constant 0 : index
    %c0_0 = arith.constant 0 : index
    %0 = vector.load %arg1[%c0, %c0_0] : memref<8x4xf32, #tpu.memory_space<vmem>>, vector<8x4xf32>
    %1 = vector.extract_strided_slice %0 {offsets = [0, 0], sizes = [8, 1], strides = [1, 1]} : vector<8x4xf32> to vector<8x1xf32>
    %c0_1 = arith.constant 0 : index
    %c0_2 = arith.constant 0 : index
    %2 = vector.load %arg2[%c0_1, %c0_2] : memref<4x128xf32, #tpu.memory_space<vmem>>, vector<1x128xf32>
    %3 = vector.broadcast %1 : vector<8x1xf32> to vector<8x128xf32>
    %4 = vector.broadcast %2 : vector<1x128xf32> to vector<8x128xf32>
    %5 = arith.mulf %3, %4 : vector<8x128xf32>
    %6 = vector.extract_strided_slice %0 {offsets = [0, 1], sizes = [8, 1], strides = [1, 1]} : vector<8x4xf32> to vector<8x1xf32>
    %c1 = arith.constant 1 : index
    %c0_3 = arith.constant 0 : index
    %7 = vector.load %arg2[%c1, %c0_3] : memref<4x128xf32, #tpu.memory_space<vmem>>, vector<1x128xf32>
    %8 = vector.broadcast %6 : vector<8x1xf32> to vector<8x128xf32>
    %9 = vector.broadcast %7 : vector<1x128xf32> to vector<8x128xf32>
    %10 = arith.mulf %8, %9 : vector<8x128xf32>
    %11 = arith.addf %5, %10 : vector<8x128xf32>
    %12 = vector.extract_strided_slice %0 {offsets = [0, 2], sizes = [8, 1], strides = [1, 1]} : vector<8x4xf32> to vector<8x1xf32>
    %c2 = arith.constant 2 : index
    %c0_4 = arith.constant 0 : index
    %13 = vector.load %arg2[%c2, %c0_4] : memref<4x128xf32, #tpu.memory_space<vmem>>, vector<1x128xf32>
    %14 = vector.broadcast %12 : vector<8x1xf32> to vector<8x128xf32>
    %15 = vector.broadcast %13 : vector<1x128xf32> to vector<8x128xf32>
    %16 = arith.mulf %14, %15 : vector<8x128xf32>
    %17 = arith.addf %11, %16 : vector<8x128xf32>
    %18 = vector.extract_strided_slice %0 {offsets = [0, 3], sizes = [8, 1], strides = [1, 1]} : vector<8x4xf32> to vector<8x1xf32>
    %c3 = arith.constant 3 : index
    %c0_5 = arith.constant 0 : index
    %19 = vector.load %arg2[%c3, %c0_5] : memref<4x128xf32, #tpu.memory_space<vmem>>, vector<1x128xf32>
    %20 = vector.broadcast %18 : vector<8x1xf32> to vector<8x128xf32>
    %21 = vector.broadcast %19 : vector<1x128xf32> to vector<8x128xf32>
    %22 = arith.mulf %20, %21 : vector<8x128xf32>
    %23 = arith.addf %17, %22 : vector<8x128xf32>
    %c0_6 = arith.constant 0 : index
    %c0_7 = arith.constant 0 : index
    %24 = vector.load %arg3[%c0_6, %c0_7] : memref<1x128xf32, #tpu.memory_space<vmem>>, vector<1x128xf32>
    %25 = math.sin %23 : vector<8x128xf32>
    %26 = vector.broadcast %24 : vector<1x128xf32> to vector<8x128xf32>
    %27 = arith.mulf %26, %25 : vector<8x128xf32>
    %cst = arith.constant 1.000000e+00 : f32
    %28 = vector.broadcast %cst : f32 to vector<1x128xf32>
    %29 = arith.subf %28, %24 : vector<1x128xf32>
    %30 = math.cos %23 : vector<8x128xf32>
    %31 = vector.broadcast %29 : vector<1x128xf32> to vector<8x128xf32>
    %32 = arith.mulf %31, %30 : vector<8x128xf32>
    %33 = arith.addf %27, %32 : vector<8x128xf32>
    %c0_8 = arith.constant 0 : index
    %c0_9 = arith.constant 0 : index
    %34 = vector.load %arg4[%c0_8, %c0_9] : memref<8x128xf32, #tpu.memory_space<vmem>>, vector<8x128xf32>
    tpu.vector_store %arg4[%c0_8, %c0_9], %33 {strides = array<i32>} : memref<8x128xf32, #tpu.memory_space<vmem>>, vector<8x128xf32>,
    return
  }
  func.func @transform_0(%arg0: i32) -> (i32, i32) {
    %c0_i32 = arith.constant 0 : i32
    %c0_i32_0 = arith.constant 0 : i32
    return %arg0, %c0_i32 : i32, i32
  }
  func.func @transform_1(%arg0: i32) -> (i32, i32) {
    %c0_i32 = arith.constant 0 : i32
    %c0_i32_0 = arith.constant 0 : i32
    %c0_i32_1 = arith.constant 0 : i32
    return %c0_i32, %c0_i32_0 : i32, i32
  }
  func.func @transform_2(%arg0: i32) -> (i32, i32) {
    %c0_i32 = arith.constant 0 : i32
    %c0_i32_0 = arith.constant 0 : i32
    %c0_i32_1 = arith.constant 0 : i32
    return %c0_i32, %c0_i32_0 : i32, i32
  }
  func.func @transform_3(%arg0: i32) -> (i32, i32) {
    %c0_i32 = arith.constant 0 : i32
    %c0_i32_0 = arith.constant 0 : i32
    return %arg0, %c0_i32 : i32, i32
  }
}

</mosaic_0001>

<bundles_post_ra>
// kernel: tpu_custom_call.1
= control target key start
LH: loop header
LB: loop body
LE: loop exit
PB: predicated region body
PF: predicated region fallthrough
CT: control target
= control target key end

     0   :  { %8 = vsyncpa [#allocation3], 0  ;;  %s645_s0 = inlined_call_operand.hbm [shape: f32[4,4], index: 0, kind: input, shape index: {}]   ;;  %s646_s1 = inlined_call_operand.hbm [shape: f32[4,128], index: 1, kind: input, shape index: {}]   ;;  %s647_s2 = inlined_call_operand.vmem [shape: f32[1,128], index: 2, kind: input, shape index: {}]   ;;  %s648_s3 = inlined_call_operand.hbm [shape: f32[4,128], index: 3, kind: output, shape index: {}]  }
   0x1   :  { %9 = vsyncpa [#allocation6], 0 }
   0x2   :  { %10 = vsyncpa [#allocation4], 0 }
   0x3   :  { %14 = vsyncadd [#allocation3], 64  ;;  %s15_s14 = sshll.u32 %s645_s0, 4  ;;  %s528_s15 = smov [#allocation2]   ;;  %s16_s14 = int_to_ptr.hbm [resolvable:$true] %s15_s14 }
   0x4   :  { %s17_s16 = sshll.u32 %s528_s15, 4  ;;  %s29_s19 = sshll.u32 %s646_s1, 4  ;;  %s18_s16 = int_to_ptr.vmem [resolvable:$true] %s17_s16  ;;  %s30_s19 = int_to_ptr.hbm [resolvable:$true] %s29_s19 }
   0x5   :  { %s529_s20 = smov 64   ;;  %s530_s21 = smov 4  }
   0x6   :  { %23 = dma.hbm_to_vmem [thread:$0]  %s16_s14, 64, %s18_s16, [#allocation3], %s529_s20, %s529_s20, %s530_s21  }
   0x7   :  { %s531_s22 = smov [#allocation5]  }
   0x8   :  { %s31_s23 = sshll.u32 %s531_s22, 4  ;;  %s32_s23 = int_to_ptr.vmem [resolvable:$true] %s31_s23 }
   0x9   :  { %34 = dma.hbm_to_vmem [thread:$0]  %s30_s19, 64, %s32_s23, [#allocation6]  }
   0xa   :  { %522 = dma.done.wait [#allocation3], 128  }
   0xb   :  { %523 = vsyncadd [#allocation3], 4294967168 }
   0xc   :  { %524 = dma.done.wait [#allocation6], 64  }
   0xd   :  { %525 = vsyncadd [#allocation6], 4294967232  ;;  %v532_v0 = vmov 0   ;;  %v533_v1 = vmov 2   ;;  %v45_v2 = vld [vmem:[#allocation2] sm:$0xff]  ;;  %v534_v3 = vmov 1  }
   0xe   :  { %440 = vset.pattern.permute.xlu0 %v532_v0  ;;  %442 = vset.pattern.permute.xlu1 %v533_v1  ;;  %v535_v4 = vmov 3   ;;  %v445_v7 = vld [vmem:[#allocation5] ss:$0 sm:$0xff]  ;;  %v447_v8 = vld [vmem:[#allocation5 + $0x1] ss:$0 sm:$0xff] }
   0xf   :  { %49 = vperm.xlu0 %440, %v45_v2   ;;  %64 = vperm.xlu1 %442, %v45_v2   ;;  %v446_v9 = vld [vmem:[#allocation5 + $0x2] ss:$0 sm:$0xff]  ;;  %v448_v10 = vld [vmem:[#allocation5 + $0x3] ss:$0 sm:$0xff]  ;;  %v536_v31 = vmov 683565275  }
  0x10   :  { %v537_v33 = vmov 2475754826   ;;  %v538_v36 = vmov 2131351028   ;;  %v539_v39 = vmov 2102212464  }
  0x11   :  { %v540_v42 = vmov 920167782   ;;  %v541_v45 = vmov 1326507024  }
  0x17   :  { %441 = vset.pattern.permute.xlu0 %v534_v3  ;;  %443 = vset.pattern.permute.xlu1 %v535_v4 }
  0x18   :  { %56 = vperm.xlu0 %441, %v45_v2   ;;  %72 = vperm.xlu1 %443, %v45_v2  }
  0x20   :  { %444 = vset.pattern.permute.xlu0 %v535_v4 }
  0x81   :  { %v50_v5 = vpop.permute.xlu0 %49  ;;  %v65_v6 = vpop.permute.xlu1 %64 }
  0x82   :  { %v53_v13 = vmul.f32 %v445_v7, %v50_v5  ;;  %v68_v15 = vmul.f32 %v446_v9, %v65_v6 }
  0x8a   :  { %v57_v11 = vpop.permute.xlu0 %56  ;;  %v73_v12 = vpop.permute.xlu1 %72 }
  0x8b   :  { %v60_v14 = vmul.f32 %v447_v8, %v57_v11  ;;  %v76_v17 = vmul.f32 %v448_v10, %v73_v12 }
  0x8d   :  { %v61_v16 = vadd.f32 %v60_v14, %v53_v13 }
  0x8f   :  { %v69_v18 = vadd.f32 %v68_v15, %v61_v16 }
  0x91   :  { %v573_v19 = vadd.f32 %v76_v17, %v69_v18 }
  0x93   :  { %v82_v20 = vand.u32 2139095040, %v573_v19  ;;  %v79_v23 = vand.u32 2147483647, %v573_v19  ;;  %vm81_vm12 = vcmp.lt.s32.totalorder %v573_v19, 0 }
  0x95   :  { %v83_v21 = vshrl.u32 %v82_v20, 23  ;;  %v86_v25 = vand.u32 8388607, %v79_v23  ;;  %vm80_vm13 = vcmp.le.f32.partialorder %v79_v23, 0.7853982 }
  0x97   :  { %v419_v22 = vadd.s32 4294967169, %v83_v21  ;;  %v87_v29 = vor.u32 8388608, %v86_v25 }
  0x99   :  { %v89_v24 = vadd.s32 1, %v419_v22  ;;  %v590_v52 = vshll.u32 %v87_v29, 8 }
  0x9b   :  { %vm90_vm0 = vcmp.gt.s32.totalorder %v89_v24, 0  ;;  %v128_v61 = vand.u32 65535, %v590_v52  ;;  %v129_v62 = vshrl.u32 %v590_v52, 16 }
  0x9c   :  { %v91_v26 = vsel %vm90_vm0, %v89_v24, 0 }
  0x9d   :  { %v93_v27 = vand.u32 31, %v91_v26  ;;  %v581_v30 = vshrl.u32 %v91_v26, 5 }
  0x9f   :  { %v579_v28 = vsub.s32 32, %v93_v27  ;;  %v96_v32 = vshll.u32 %v536_v31, %v93_v27  ;;  %v99_v34 = vshll.u32 %v537_v33, %v93_v27  ;;  %v102_v38 = vshll.u32 %v538_v36, %v93_v27 }
  0xa0   :  { %v105_v41 = vshll.u32 %v539_v39, %v93_v27  ;;  %v108_v44 = vshll.u32 %v540_v42, %v93_v27  ;;  %vm111_vm1 = vcmp.lt.s32.totalorder %v581_v30, 1  ;;  %vm114_vm2 = vcmp.lt.s32.totalorder %v581_v30, 4 }
  0xa1   :  { %v97_v35 = vshrl.u32 %v537_v33, %v579_v28  ;;  %v100_v37 = vshrl.u32 %v538_v36, %v579_v28  ;;  %v103_v40 = vshrl.u32 %v539_v39, %v579_v28  ;;  %v106_v43 = vshrl.u32 %v540_v42, %v579_v28 }
  0xa2   :  { %v109_v46 = vshrl.u32 %v541_v45, %v579_v28  ;;  %vm113_vm3 = vcmp.lt.s32.totalorder %v581_v30, 3  ;;  %vm112_vm4 = vcmp.lt.s32.totalorder %v581_v30, 2  ;;  %v95_v26 = vshrl.u32 %v536_v31, %v579_v28 }
  0xa3   :  { %v98_v47 = vor.u32 %v97_v35, %v96_v32  ;;  %v101_v48 = vor.u32 %v100_v37, %v99_v34  ;;  %v104_v49 = vor.u32 %v103_v40, %v102_v38  ;;  %v107_v50 = vor.u32 %v106_v43, %v105_v41 }
  0xa4   :  { %v110_v51 = vor.u32 %v109_v46, %v108_v44 }
  0xa5   :  { %v119_v53 = vsel %vm111_vm1, %v98_v47, %v101_v48  ;;  %v123_v54 = vsel %vm111_vm1, %v101_v48, %v104_v49  ;;  %v120_v55 = vsel %vm114_vm2, %v107_v50, 920167782  ;;  %v116_v22 = vsel %vm114_vm2, %v104_v49, 2102212464 }
  0xa6   :  { %v124_v56 = vsel %vm114_vm2, %v110_v51, 1326507024  ;;  %v121_v57 = vsel %vm113_vm3, %v104_v49, %v120_v55  ;;  %v115_v35 = vsel %vm111_vm1, %v95_v26, %v98_v47  ;;  %v117_v36 = vsel %vm113_vm3, %v101_v48, %v116_v22 }
  0xa7   :  { %v125_v58 = vsel %vm113_vm3, %v107_v50, %v124_v56  ;;  %v122_v59 = vsel %vm112_vm4, %v119_v53, %v121_v57  ;;  %v118_v28 = vsel %vm112_vm4, %v115_v35, %v117_v36  ;;  %v449_v35 = vld [vmem:[%s647_s2] ss:$0 sm:$0xff] }
  0xa8   :  { %v126_v60 = vsel %vm112_vm4, %v123_v54, %v125_v58  ;;  %v152_v2 = vand.u32 65535, %v122_v59  ;;  %v153_v3 = vshrl.u32 %v122_v59, 16  ;;  %v172_v43 = vmul.u32 %v590_v52, %v118_v28 }
  0xa9   :  { %v130_v63 = vand.u32 65535, %v126_v60  ;;  %v131_v1 = vshrl.u32 %v126_v60, 16  ;;  %vm222_vm4 = vweird.f32 %v573_v19 }
  0xaa   :  { %v155_v6 = vmul.u32 %v153_v3, %v128_v61  ;;  %v156_v7 = vmul.u32 %v152_v2, %v129_v62  ;;  %v154_v11 = vmul.u32 %v152_v2, %v128_v61  ;;  %v157_v15 = vmul.u32 %v153_v3, %v129_v62 }
  0xab   :  { %v133_v4 = vmul.u32 %v131_v1, %v128_v61  ;;  %v134_v5 = vmul.u32 %v130_v63, %v129_v62  ;;  %v132_v8 = vmul.u32 %v130_v63, %v128_v61  ;;  %v135_v10 = vmul.u32 %v131_v1, %v129_v62 }
  0xac   :  { %v158_v12 = vshll.u32 %v155_v6, 16  ;;  %v160_v17 = vshll.u32 %v156_v7, 16  ;;  %v159_v33 = vshrl.u32 %v155_v6, 16  ;;  %v161_v39 = vshrl.u32 %v156_v7, 16 }
  0xad   :  { %v136_v9 = vshll.u32 %v133_v4, 16  ;;  %v138_v13 = vshll.u32 %v134_v5, 16  ;;  %v137_v27 = vshrl.u32 %v133_v4, 16  ;;  %v139_v37 = vshrl.u32 %v134_v5, 16 }
  0xae   :  { %vm162_vm6 = vc.u32 %v154_v11, %v158_v12  ;;  %v164_v18 = vadd.s32 %v158_v12, %v154_v11 }
  0xaf   :  { %vm140_vm5 = vc.u32 %v132_v8, %v136_v9  ;;  %v142_v14 = vadd.s32 %v136_v9, %v132_v8  ;;  %v163_v21 = vsel %vm162_vm6, 1, %v532_v0 }
  0xb0   :  { %v141_v16 = vsel %vm140_vm5, 1, %v532_v0  ;;  %v165_v25 = vadd.s32 %v163_v21, %v157_v15  ;;  %vm166_vm8 = vc.u32 %v164_v18, %v160_v17  ;;  %v168_v42 = vadd.s32 %v164_v18, %v160_v17  ;;  %v78_v18 = vld [vmem:[%s647_s2] sm:$0x1] }
  0xb1   :  { %v143_v20 = vadd.s32 %v141_v16, %v135_v10  ;;  %vm144_vm7 = vc.u32 %v142_v14, %v138_v13  ;;  %v167_v32 = vsel %vm166_vm8, 1, %v532_v0  ;;  %v238_v22 = vsub.f32 1.0, %v78_v18 }
  0xb2   :  { %v145_v24 = vsel %vm144_vm7, 1, %v532_v0  ;;  %v169_v34 = vadd.s32 %v167_v32, %v165_v25 }
  0xb3   :  { %v147_v29 = vadd.s32 %v145_v24, %v143_v20 }
  0xb4   :  { %v170_v40 = vadd.s32 %v169_v34, %v159_v33  ;;  %v394_v33 = vperm.slane %v238_v22, 0 }
  0xb5   :  { %v148_v38 = vadd.s32 %v147_v29, %v137_v27 }
  0xb6   :  { %v171_v31 = vadd.s32 %v170_v40, %v161_v39 }
  0xb7   :  { %v149_v41 = vadd.s32 %v148_v38, %v139_v37 }
  0xb8   :  { %v175_v0 = vadd.s32 1, %v171_v31 }
  0xb9   :  { %vm174_vm9 = vc.u32 %v149_v41, %v168_v42  ;;  %v173_v30 = vadd.s32 %v168_v42, %v149_v41 }
  0xba   :  { %v176_v44 = vsel %vm174_vm9, %v175_v0, %v171_v31 }
  0xbb   :  { %v177_v45 = vadd.s32 %v176_v44, %v172_v43 }
  0xbd   :  { %v178_v46 = vadd.s32 536870912, %v177_v45 }
  0xbf   :  { %v179_v47 = vshrl.u32 %v178_v46, 30 }
  0xc1   :  { %v180_v49 = vshll.u32 %v179_v47, 30  ;;  %v203_v5 = vsub.s32 4, %v179_v47 }
  0xc3   :  { %v181_v48 = vsub.s32 %v177_v45, %v180_v49  ;;  %v204_v10 = vsel %vm81_vm12, %v203_v5, %v179_v47 }
  0xc4   :  { %v206_v13 = vsel %vm80_vm13, 0, %v204_v10 }
  0xc5   :  { %vm182_vm10 = vcmp.lt.s32.totalorder %v181_v48, 0  ;;  %v183_v50 = vsub.s32 0, %v181_v48  ;;  %v223_v23 = vadd.s32 3, %v206_v13  ;;  %v383_v26 = vand.u32 3, %v206_v13 }
  0xc7   :  { %v184_v51 = vsel %vm182_vm10, %v183_v50, %v181_v48  ;;  %v224_v27 = vand.u32 3, %v223_v23  ;;  %vm384_vm14 = vcmp.lt.s32.totalorder %v383_v26, 2  ;;  %vm385_vm15 = vcmp.eq.s32.totalorder %v383_v26, 0 }
  0xc8   :  { %v185_v53 = vclz %v184_v51  ;;  %vm388_vm3 = vcmp.eq.s32.totalorder %v383_v26, 2 }
  0xc9   :  { %vm225_vm0 = vcmp.lt.s32.totalorder %v224_v27, 2  ;;  %vm226_vm1 = vcmp.eq.s32.totalorder %v224_v27, 0  ;;  %vm229_vm2 = vcmp.eq.s32.totalorder %v224_v27, 2 }
  0xca   :  { %v420_v54 = vadd.s32 4294967294, %v185_v53 }
  0xcc   :  { %vm421_vm11 = vcmp.lt.s32.totalorder %v420_v54, 0 }
  0xcd   :  { %v188_v55 = vsel %vm421_vm11, 0, %v420_v54 }
  0xce   :  { %v189_v56 = vsub.s32 32, %v188_v55  ;;  %v193_v57 = vsub.s32 4294967266, %v188_v55  ;;  %v190_v58 = vshll.u32 %v181_v48, %v188_v55 }
  0xd0   :  { %v191_v59 = vshrl.u32 %v173_v30, %v189_v56  ;;  %v194_v60 = vadd.s32 127, %v193_v57 }
  0xd2   :  { %v192_v52 = vor.u32 %v191_v59, %v190_v58  ;;  %v195_v61 = vshll.u32 %v194_v60, 23 }
  0xd4   :  { %v196_v62 = vor.u32 4788187, %v195_v61  ;;  %v199_v1 = vcvt.s32.f32 %v192_v52 }
  0xd6   :  { %v197_v63 = vand.u32 2147483647, %v196_v62 }
  0xd8   :  { %v200_v2 = vmul.f32 %v199_v1, %v197_v63 }
  0xda   :  { %v201_v3 = vxor.u32 2147483648, %v200_v2 }
  0xdc   :  { %v202_v4 = vsel %vm81_vm12, %v201_v3, %v200_v2 }
  0xdd   :  { %v205_v6 = vsel %vm80_vm13, %v573_v19, %v202_v4 }
  0xde   :  { %v207_v7 = vmul.f32 %v205_v6, %v205_v6 }
  0xe0   :  { %v208_v8 = vmul.f32 -0.001358992, %v207_v7  ;;  %v215_v9 = vmul.f32 -0.00019511016, %v207_v7 }
  0xe2   :  { %v209_v11 = vadd.f32 0.041655596, %v208_v8  ;;  %v216_v12 = vadd.f32 0.008332121, %v215_v9 }
  0xe4   :  { %v210_v14 = vmul.f32 %v209_v11, %v207_v7  ;;  %v217_v15 = vmul.f32 %v216_v12, %v207_v7 }
  0xe6   :  { %v211_v16 = vadd.f32 -0.4999988, %v210_v14  ;;  %v218_v17 = vadd.f32 -0.16666654, %v217_v15 }
  0xe8   :  { %v212_v20 = vmul.f32 %v211_v16, %v207_v7  ;;  %v219_v21 = vmul.f32 %v218_v17, %v207_v7 }
  0xea   :  { %v213_v24 = vadd.f32 1.0, %v212_v20  ;;  %v220_v25 = vadd.f32 1.0, %v219_v21 }
  0xec   :  { %v221_v29 = vmul.f32 %v220_v25, %v205_v6  ;;  %v230_v32 = vxor.u32 2147483648, %v213_v24 }
  0xee   :  { %v227_v34 = vxor.u32 2147483648, %v221_v29  ;;  %v231_v37 = vsel %vm229_vm2, %v230_v32, %v221_v29  ;;  %v390_v39 = vsel %vm388_vm3, %v230_v32, %v221_v29 }
  0xf0   :  { %v228_v36 = vsel %vm226_vm1, %v213_v24, %v227_v34  ;;  %v387_v38 = vsel %vm385_vm15, %v213_v24, %v227_v34 }
  0xf1   :  { %v232_v40 = vsel %vm225_vm0, %v228_v36, %v231_v37  ;;  %v391_v41 = vsel %vm384_vm14, %v387_v38, %v390_v39 }
  0xf2   :  { %v233_v42 = vsel %vm222_vm4, nan, %v232_v40  ;;  %v392_v28 = vsel %vm222_vm4, nan, %v391_v41 }
  0xf3   :  { %v237_v31 = vmul.f32 %v449_v35, %v233_v42  ;;  %v396_v0 = vmul.f32 %v394_v33, %v392_v28 }
  0xf5   :  { %v397_v43 = vadd.f32 %v396_v0, %v237_v31 }
  0xf7   :  { %398 = vst [vmem:[#allocation7] sm:$0xff] %v397_v43 }
  0xf8   :  { %402 = vsyncadd [#allocation4], 64  ;;  %s405_s27 = sshll.u32 %s648_s3, 4  ;;  %s542_s28 = smov [#allocation7]   ;;  %s406_s27 = int_to_ptr.hbm [resolvable:$true] %s405_s27 }
  0xf9   :  { %s403_s29 = sshll.u32 %s542_s28, 4  ;;  %s404_s29 = int_to_ptr.vmem [resolvable:$true] %s403_s29 }
  0xfa   :  { %411 = dma.vmem_to_hbm [thread:$0]  %s404_s29, 64, %s406_s27, [#allocation4], %s529_s20, %s529_s20, %s530_s21  }
  0xfb   :  { %526 = dma.done.wait [#allocation4], 128  }
  0xfc   :  { %527 = vsyncadd [#allocation4], 4294967168 }
  0xfd   :  { %416 = vsyncpa [#allocation3], 1 }
  0xfe   :  { %417 = vsyncpa [#allocation6], 1 }
  0xff   :  { %418 = vsyncpa [#allocation4], 1 }

</bundles_post_ra>
